<compile_context>
chip_gen: v7x
topology: tpu7x:2x2x1
jax: 0.10.0
libtpu: 0.0.40
codegen_flags: <defaults>
</compile_context>

<pallas_src>
import functools

import jax
import jax.numpy as jnp
import numpy as np
from jax.experimental import pallas as pl
from jax.experimental.pallas import tpu as pltpu

_ROW_ALIGN = 16  # bf16 sublane packing: keep row-block sizes multiples of 16


def _round_up(x, m):
    return ((x + m - 1) // m) * m


def _pad_channels(c):
    # Lane-dense padding only when the amplification is acceptable.
    if c % 128 == 0 or c < 64:
        return c
    return _round_up(c, 128)


def _pad_cols(a, cols):
    return jnp.pad(a, ((0, 0), (0, cols - a.shape[1])))


def _pad_vec(v, n):
    return jnp.pad(v.astype(jnp.float32), (0, n - v.shape[0]))


# ---------------------------------------------------------------------------
# Pallas kernel:
#   out = [relu]( (patches @ W) * bn_scale + bn_shift
#                 [+ p3 @ W3]          # fused 1x1 stride-2 projection
#                 [+ residual] )       # precomputed identity residual
# (conv biases are pre-folded into bn_shift by the wrapper).
# ---------------------------------------------------------------------------
def _fused_conv_kernel(*refs, apply_relu, has_residual, has_proj):
    it = iter(refs)
    p_ref = next(it)
    w_ref = next(it)
    sc_ref = next(it)
    sh_ref = next(it)
    p3_ref = w3_ref = r_ref = None
    if has_proj:
        p3_ref = next(it)
        w3_ref = next(it)
    if has_residual:
        r_ref = next(it)
    o_ref = next(it)

    acc = jnp.dot(p_ref[...], w_ref[...], preferred_element_type=jnp.float32)
    acc = acc * sc_ref[...] + sh_ref[...]
    if has_proj:
        acc = acc + jnp.dot(p3_ref[...], w3_ref[...],
                            preferred_element_type=jnp.float32)
    if has_residual:
        acc = acc + r_ref[...].astype(jnp.float32)
    if apply_relu:
        acc = jnp.maximum(acc, 0.0)
    o_ref[...] = acc.astype(o_ref.dtype)


def _choose_tm(Mp, per_row_bytes, fixed_bytes, tm_max=512, budget=24 << 20):
    """Pick a row-block size that fits the VMEM budget and leaves >= 2 blocks."""
    tm = min(tm_max, Mp)
    row_budget = max(budget - fixed_bytes, _ROW_ALIGN * per_row_bytes)
    while tm > _ROW_ALIGN and tm * per_row_bytes > row_budget:
        tm -= _ROW_ALIGN
    # Prefer >= 2 row blocks so "parallel" can use both v7x TensorCores.
    if Mp // tm < 2 and Mp >= 2 * _ROW_ALIGN:
        tm = max(_ROW_ALIGN, (Mp // 2 // _ROW_ALIGN) * _ROW_ALIGN)
    return tm


def fused_conv_block(patches, w_mat, bn_scale, bn_shift, *, residual=None,
                     proj=None, apply_relu, out_dtype):
    """patches: (M, K) bf16; w_mat: (K, Cp) bf16; bn_scale/bn_shift: (Cp,) f32;
    residual: (M, Cp) bf16 or None; proj: (p3 (M, Cin) bf16, w3 (Cin, Cp) bf16)
    or None.  Returns (M, Cp) in `out_dtype`."""
    M, K = patches.shape
    Kw, Cp = w_mat.shape
    assert Kw == K
    has_residual = residual is not None
    has_proj = proj is not None
    assert not (has_residual and has_proj)

    # Row padding so TM can be chosen independent of M (no TM = M fallback).
    Mp = _round_up(M, _ROW_ALIGN)
    pad_rows = Mp - M
    if pad_rows:
        patches = jnp.pad(patches, ((0, pad_rows), (0, 0)))
        if has_residual:
            residual = jnp.pad(residual, ((0, pad_rows), (0, 0)))
    if has_proj:
        p3, w3 = proj
        if pad_rows:
            p3 = jnp.pad(p3, ((0, pad_rows), (0, 0)))
        Cin_p = p3.shape[1]

    scale2 = bn_scale.reshape(1, Cp).astype(jnp.float32)
    shift2 = bn_shift.reshape(1, Cp).astype(jnp.float32)
    out_bytes = jnp.dtype(out_dtype).itemsize

    # VMEM budget accounting (x2 = default double buffering per block).
    per_row = 2 * (K * 2 + Cp * out_bytes)            # patches + output
    fixed = 2 * (K * Cp * 2) + 2 * 2 * (Cp * 4)       # weights + scale/shift
    if has_residual:
        per_row += 2 * (Cp * 2)
    if has_proj:
        per_row += 2 * (Cin_p * 2)
        fixed += 2 * (Cin_p * Cp * 2)

    TM = _choose_tm(Mp, per_row, fixed)
    vmem_bytes = fixed + TM * per_row
    vmem_limit = int(min(max(vmem_bytes + (4 << 20), 16 << 20), 32 << 20))

    in_specs = [
        pl.BlockSpec((TM, K), lambda i: (i, 0)),   # patches tile (bf16)
        pl.BlockSpec((K, Cp), lambda i: (0, 0)),   # weights, grid-invariant
        pl.BlockSpec((1, Cp), lambda i: (0, 0)),   # BN scale
        pl.BlockSpec((1, Cp), lambda i: (0, 0)),   # BN shift (+ folded biases)
    ]
    args = [patches, w_mat, scale2, shift2]
    flops = 2 * Mp * K * Cp
    bytes_accessed = (patches.size * 2 + w_mat.size * 2 + 2 * Cp * 4
                      + Mp * Cp * out_bytes)
    if has_proj:
        in_specs += [pl.BlockSpec((TM, Cin_p), lambda i: (i, 0)),
                     pl.BlockSpec((Cin_p, Cp), lambda i: (0, 0))]
        args += [p3, w3]
        flops += 2 * Mp * Cin_p * Cp
        bytes_accessed += p3.size * 2 + w3.size * 2
    if has_residual:
        in_specs.append(pl.BlockSpec((TM, Cp), lambda i: (i, 0)))
        args.append(residual)
        bytes_accessed += residual.size * 2

    out = pl.pallas_call(
        functools.partial(_fused_conv_kernel, apply_relu=apply_relu,
                          has_residual=has_residual, has_proj=has_proj),
        out_shape=jax.ShapeDtypeStruct((Mp, Cp), out_dtype),
        grid_spec=pltpu.PrefetchScalarGridSpec(
            num_scalar_prefetch=0,
            grid=(pl.cdiv(Mp, TM),),
            in_specs=in_specs,
            out_specs=pl.BlockSpec((TM, Cp), lambda i: (i, 0)),
        ),
        compiler_params=pltpu.CompilerParams(
            dimension_semantics=("parallel",),
            vmem_limit_bytes=vmem_limit),
        cost_estimate=pl.CostEstimate(flops=int(flops), transcendentals=0,
                                      bytes_accessed=int(bytes_accessed)),
    )(*args)
    return out[:M] if pad_rows else out


# ---------------------------------------------------------------------------
# Glue: im2col + weight reshuffling (plain JAX, operates in bf16)
# ---------------------------------------------------------------------------
def im2col(x_nhwc, ksize, stride, pad):
    N, H, W, C = x_nhwc.shape
    xp = jnp.pad(x_nhwc, ((0, 0), (pad, pad), (pad, pad), (0, 0)))
    Ho = (H + 2 * pad - ksize) // stride + 1
    Wo = (W + 2 * pad - ksize) // stride + 1
    taps = []
    for kh in range(ksize):
        for kw in range(ksize):
            taps.append(
                xp[:, kh:kh + stride * (Ho - 1) + 1:stride,
                      kw:kw + stride * (Wo - 1) + 1:stride, :])
    patches = jnp.stack(taps, axis=3)                  # (N, Ho, Wo, K*K, C)
    return patches.reshape(N * Ho * Wo, ksize * ksize * C), Ho, Wo


def conv_weight_to_mat(w_oihw):
    # (Cout, Cin, KH, KW) -> (KH*KW*Cin, Cout), matching im2col tap ordering
    return jnp.transpose(w_oihw, (2, 3, 1, 0)).reshape(-1, w_oihw.shape[0])


# ---------------------------------------------------------------------------
# ResidualBlock forward (eval mode), NCHW in / NCHW out
# ---------------------------------------------------------------------------
def residual_block_forward(x_nchw, params, *, is_plain, is_identity, eps=1e-5):
    # bf16 up-front: all im2col / residual / projection operands are bf16.
    x = jnp.transpose(x_nchw, (0, 2, 3, 1)).astype(jnp.bfloat16)   # -> NHWC
    N, H, W, Cin = x.shape
    Cout = params["w1"].shape[0]
    Cp = _pad_channels(Cout)

    bn_scale = params["bn_gamma"] / jnp.sqrt(params["bn_var"] + eps)
    bn_shift = params["bn_beta"] - params["bn_mean"] * bn_scale
    # Fold conv biases into the BN shift: (conv + b)*s + t == conv*s + (b*s + t)
    shift1 = params["b1"] * bn_scale + bn_shift
    shift2 = params["b2"] * bn_scale + bn_shift

    has_proj = (not is_plain) and (not is_identity)
    if has_proj:
        # conv3 bias rides in the conv2 epilogue shift (projection is fused).
        shift2 = shift2 + params["b3"]

    scale_p = _pad_vec(bn_scale, Cp)
    shift1_p = _pad_vec(shift1, Cp)
    shift2_p = _pad_vec(shift2, Cp)

    w1 = _pad_cols(conv_weight_to_mat(params["w1"]), Cp).astype(jnp.bfloat16)
    w2 = _pad_cols(conv_weight_to_mat(params["w2"]), Cp).astype(jnp.bfloat16)

    stride1 = 1 if is_identity else 2

    # conv1 + BN + ReLU — bf16 output (it feeds the next im2col immediately)
    p1, Ho, Wo = im2col(x, 3, stride1, 1)
    h1 = fused_conv_block(p1, w1, scale_p, shift1_p,
                          apply_relu=True, out_dtype=jnp.bfloat16)
    M = N * Ho * Wo

    residual = None
    proj = None
    if not is_plain:
        if has_proj:
            # 1x1 stride-2 projection: fused into the conv2 kernel epilogue.
            w3 = _pad_cols(conv_weight_to_mat(params["w3"]), Cp).astype(jnp.bfloat16)
            p3 = x[:, ::2, ::2, :].reshape(M, Cin)       # already bf16
            proj = (p3, w3)
        else:
            residual = _pad_cols(x.reshape(M, Cin), Cp)  # bf16, Cin == Cout

    # conv2 + BN + (dropout = identity in eval) + projection/residual + ReLU
    h1_nhwc = h1[:, :Cout].reshape(N, Ho, Wo, Cout)
    p2, _, _ = im2col(h1_nhwc, 3, 1, 1)
    out = fused_conv_block(p2, w2, scale_p, shift2_p, residual=residual,
                           proj=proj, apply_relu=True, out_dtype=jnp.float32)
    out = out[:, :Cout].reshape(N, Ho, Wo, Cout)
    return jnp.transpose(out, (0, 3, 1, 2))              # -> NCHW


# ---------------------------------------------------------------------------
# Pure-JAX reference. matmul_dtype=bf16 mirrors the kernel's precision choices
# (bf16 matmul operands, bf16 h1 intermediate, f32 fused projection epilogue);
# matmul_dtype=f32 is the pure module semantics.
# ---------------------------------------------------------------------------
def _conv_ref(x_f32, w_oihw, b, stride, pad, matmul_dtype):
    xr = x_f32.astype(matmul_dtype).astype(jnp.float32)
    wr = jnp.transpose(w_oihw, (2, 3, 1, 0)).astype(matmul_dtype).astype(jnp.float32)
    out = jax.lax.conv_general_dilated(
        xr, wr, window_strides=(stride, stride),
        padding=((pad, pad), (pad, pad)),
        dimension_numbers=("NHWC", "HWIO", "NHWC"),
        precision=jax.lax.Precision.HIGHEST)
    return out + b.reshape(1, 1, 1, -1)


def residual_block_ref(x_nchw, params, *, is_plain, is_identity, eps=1e-5,
                       matmul_dtype=jnp.float32):
    x = jnp.transpose(x_nchw, (0, 2, 3, 1)).astype(matmul_dtype).astype(jnp.float32)
    bn_scale = params["bn_gamma"] / jnp.sqrt(params["bn_var"] + eps)
    bn_shift = params["bn_beta"] - params["bn_mean"] * bn_scale
    bn = lambda t: t * bn_scale.reshape(1, 1, 1, -1) + bn_shift.reshape(1, 1, 1, -1)
    stride1 = 1 if is_identity else 2
    h = jnp.maximum(bn(_conv_ref(x, params["w1"], params["b1"], stride1, 1,
                                 matmul_dtype)), 0.0)
    h = h.astype(matmul_dtype).astype(jnp.float32)   # kernel stores h1 in bf16
    h = bn(_conv_ref(h, params["w2"], params["b2"], 1, 1, matmul_dtype))
    if not is_plain:
        if not is_identity:
            # projection fused in-kernel: stays f32 after bf16-operand matmul
            y = _conv_ref(x, params["w3"], params["b3"], 2, 0, matmul_dtype)
        else:
            y = x                                     # bf16-rounded input
        h = h + y
    return jnp.transpose(jnp.maximum(h, 0.0), (0, 3, 1, 2))


# ---------------------------------------------------------------------------
if __name__ == "__main__":
    key = jax.random.PRNGKey(0)

    def make_params(Cin, Cout, k):
        ks = jax.random.split(k, 10)
        return {
            "w1": 0.1 * jax.random.normal(ks[0], (Cout, Cin, 3, 3), jnp.float32),
            "b1": 0.1 * jax.random.normal(ks[1], (Cout,), jnp.float32),
            "w2": 0.1 * jax.random.normal(ks[2], (Cout, Cout, 3, 3), jnp.float32),
            "b2": 0.1 * jax.random.normal(ks[3], (Cout,), jnp.float32),
            "w3": 0.1 * jax.random.normal(ks[4], (Cout, Cin, 1, 1), jnp.float32),
            "b3": 0.1 * jax.random.normal(ks[5], (Cout,), jnp.float32),
            "bn_gamma": 1.0 + 0.1 * jax.random.normal(ks[6], (Cout,), jnp.float32),
            "bn_beta": 0.1 * jax.random.normal(ks[7], (Cout,), jnp.float32),
            "bn_mean": 0.1 * jax.random.normal(ks[8], (Cout,), jnp.float32),
            "bn_var": 1.0 + 0.1 * jnp.abs(jax.random.normal(ks[9], (Cout,), jnp.float32)),
        }

    configs = [
        # (name, N, Cin, H, W, Cout, is_plain)
        ("projection", 2, 4, 16, 16, 8, False),   # stride-2 + fused 1x1 conv3
        ("identity",   2, 8, 16, 16, 8, False),   # identity residual add
        ("plain",      2, 4, 16, 16, 8, True),    # no residual
    ]

    for idx, (name, N, Cin, H, W, Cout, is_plain) in enumerate(configs):
        is_identity = (Cin == Cout)
        kparam, kx = jax.random.split(jax.random.fold_in(key, idx))
        params = make_params(Cin, Cout, kparam)
        x = jax.random.normal(kx, (N, Cin, H, W), jnp.float32)

        fwd = jax.jit(functools.partial(residual_block_forward,
                                        is_plain=is_plain,
                                        is_identity=is_identity))
        out = jax.block_until_ready(fwd(x, params))

        ref_bf16 = jax.block_until_ready(
            residual_block_ref(x, params, is_plain=is_plain,
                               is_identity=is_identity,
                               matmul_dtype=jnp.bfloat16))
        ref_f32 = jax.block_until_ready(
            residual_block_ref(x, params, is_plain=is_plain,
                               is_identity=is_identity,
                               matmul_dtype=jnp.float32))

        assert out.shape == ref_f32.shape, (name, out.shape, ref_f32.shape)
        # Tight check vs. a reference using identical bf16 precision choices.
        np.testing.assert_allclose(np.asarray(out), np.asarray(ref_bf16),
                                   rtol=2e-3, atol=3e-3, err_msg=name)
        # Loose sanity check vs. pure-f32 module semantics (bf16 rounding only).
        np.testing.assert_allclose(np.asarray(out), np.asarray(ref_f32),
                                   rtol=5e-2, atol=5e-2, err_msg=name)

    print("KERNEL_OK")
</pallas_src>

<mosaic_0001>
module attributes {stable_mosaic.version = 11 : i64} {
  func.func @_fused_conv_kernel(%arg0: i32, %arg1: memref<64x36xbf16, #tpu.memory_space<vmem>>, %arg2: memref<36x8xbf16, #tpu.memory_space<vmem>>, %arg3: memref<1x8xf32, #tpu.memory_space<vmem>>, %arg4: memref<1x8xf32, #tpu.memory_space<vmem>>, %arg5: memref<64x8xbf16, #tpu.memory_space<vmem>>) attributes {dimension_semantics = [#tpu.dimension_semantics<parallel>], iteration_bounds = array<i64: 2>, scalar_prefetch = 0 : i64, scratch_operands = 0 : i64, tpu.core_type = #tpu.core_type<tc>, window_params = [{transform_indices = @transform_0, window_bounds = array<i64: 64, 36>}, {pipeline_mode = #tpu.pipeline_mode<synchronous>, transform_indices = @transform_1, window_bounds = array<i64: 36, 8>}, {pipeline_mode = #tpu.pipeline_mode<synchronous>, transform_indices = @transform_2, window_bounds = array<i64: 1, 8>}, {pipeline_mode = #tpu.pipeline_mode<synchronous>, transform_indices = @transform_3, window_bounds = array<i64: 1, 8>}, {transform_indices = @transform_4, window_bounds = array<i64: 64, 8>}]} {
    %c0 = arith.constant 0 : index
    %c0_0 = arith.constant 0 : index
    %0 = vector.load %arg1[%c0, %c0_0] : memref<64x36xbf16, #tpu.memory_space<vmem>>, vector<64x36xbf16>
    %c0_1 = arith.constant 0 : index
    %c0_2 = arith.constant 0 : index
    %1 = vector.load %arg2[%c0_1, %c0_2] : memref<36x8xbf16, #tpu.memory_space<vmem>>, vector<36x8xbf16>
    %cst = arith.constant dense<0.000000e+00> : vector<64x8xf32>
    %2 = tpu.matmul %0, %1, %cst {dimension_numbers = #tpu.dot_dimension_numbers<[1], [0], [0], [1], [0, 0, 1, 1], [], []>} : vector<64x36xbf16>, vector<36x8xbf16>, vector<64x8xf32> -> vector<64x8xf32>
    %c0_3 = arith.constant 0 : index
    %c0_4 = arith.constant 0 : index
    %3 = vector.load %arg3[%c0_3, %c0_4] : memref<1x8xf32, #tpu.memory_space<vmem>>, vector<1x8xf32>
    %4 = vector.broadcast %3 : vector<1x8xf32> to vector<64x8xf32>
    %5 = arith.mulf %2, %4 : vector<64x8xf32>
    %c0_5 = arith.constant 0 : index
    %c0_6 = arith.constant 0 : index
    %6 = vector.load %arg4[%c0_5, %c0_6] : memref<1x8xf32, #tpu.memory_space<vmem>>, vector<1x8xf32>
    %7 = vector.broadcast %6 : vector<1x8xf32> to vector<64x8xf32>
    %8 = arith.addf %5, %7 : vector<64x8xf32>
    %cst_7 = arith.constant 0.000000e+00 : f32
    %9 = vector.broadcast %cst_7 : f32 to vector<64x8xf32>
    %10 = arith.maximumf %8, %9 : vector<64x8xf32>
    %11 = arith.truncf %10 : vector<64x8xf32> to vector<64x8xbf16>
    %c0_8 = arith.constant 0 : index
    %c0_9 = arith.constant 0 : index
    %12 = vector.load %arg5[%c0_8, %c0_9] : memref<64x8xbf16, #tpu.memory_space<vmem>>, vector<64x8xbf16>
    tpu.vector_store %arg5[%c0_8, %c0_9], %11 {strides = array<i32>} : memref<64x8xbf16, #tpu.memory_space<vmem>>, vector<64x8xbf16>,
    return
  }
  func.func @transform_0(%arg0: i32) -> (i32, i32) {
    %c0_i32 = arith.constant 0 : i32
    %c0_i32_0 = arith.constant 0 : i32
    return %arg0, %c0_i32 : i32, i32
  }
  func.func @transform_1(%arg0: i32) -> (i32, i32) {
    %c0_i32 = arith.constant 0 : i32
    %c0_i32_0 = arith.constant 0 : i32
    %c0_i32_1 = arith.constant 0 : i32
    return %c0_i32, %c0_i32_0 : i32, i32
  }
  func.func @transform_2(%arg0: i32) -> (i32, i32) {
    %c0_i32 = arith.constant 0 : i32
    %c0_i32_0 = arith.constant 0 : i32
    %c0_i32_1 = arith.constant 0 : i32
    return %c0_i32, %c0_i32_0 : i32, i32
  }
  func.func @transform_3(%arg0: i32) -> (i32, i32) {
    %c0_i32 = arith.constant 0 : i32
    %c0_i32_0 = arith.constant 0 : i32
    %c0_i32_1 = arith.constant 0 : i32
    return %c0_i32, %c0_i32_0 : i32, i32
  }
  func.func @transform_4(%arg0: i32) -> (i32, i32) {
    %c0_i32 = arith.constant 0 : i32
    %c0_i32_0 = arith.constant 0 : i32
    return %arg0, %c0_i32 : i32, i32
  }
}

module attributes {stable_mosaic.version = 11 : i64} {
  func.func @_fused_conv_kernel(%arg0: i32, %arg1: memref<64x72xbf16, #tpu.memory_space<vmem>>, %arg2: memref<72x8xbf16, #tpu.memory_space<vmem>>, %arg3: memref<1x8xf32, #tpu.memory_space<vmem>>, %arg4: memref<1x8xf32, #tpu.memory_space<vmem>>, %arg5: memref<64x4xbf16, #tpu.memory_space<vmem>>, %arg6: memref<4x8xbf16, #tpu.memory_space<vmem>>, %arg7: memref<64x8xf32, #tpu.memory_space<vmem>>) attributes {dimension_semantics = [#tpu.dimension_semantics<parallel>], iteration_bounds = array<i64: 2>, scalar_prefetch = 0 : i64, scratch_operands = 0 : i64, tpu.core_type = #tpu.core_type<tc>, window_params = [{transform_indices = @transform_0, window_bounds = array<i64: 64, 72>}, {pipeline_mode = #tpu.pipeline_mode<synchronous>, transform_indices = @transform_1, window_bounds = array<i64: 72, 8>}, {pipeline_mode = #tpu.pipeline_mode<synchronous>, transform_indices = @transform_2, window_bounds = array<i64: 1, 8>}, {pipeline_mode = #tpu.pipeline_mode<synchronous>, transform_indices = @transform_3, window_bounds = array<i64: 1, 8>}, {transform_indices = @transform_4, window_bounds = array<i64: 64, 4>}, {pipeline_mode = #tpu.pipeline_mode<synchronous>, transform_indices = @transform_5, window_bounds = array<i64: 4, 8>}, {transform_indices = @transform_6, window_bounds = array<i64: 64, 8>}]} {
    %c0 = arith.constant 0 : index
    %c0_0 = arith.constant 0 : index
    %0 = vector.load %arg1[%c0, %c0_0] : memref<64x72xbf16, #tpu.memory_space<vmem>>, vector<64x72xbf16>
    %c0_1 = arith.constant 0 : index
    %c0_2 = arith.constant 0 : index
    %1 = vector.load %arg2[%c0_1, %c0_2] : memref<72x8xbf16, #tpu.memory_space<vmem>>, vector<72x8xbf16>
    %cst = arith.constant dense<0.000000e+00> : vector<64x8xf32>
    %2 = tpu.matmul %0, %1, %cst {dimension_numbers = #tpu.dot_dimension_numbers<[1], [0], [0], [1], [0, 0, 1, 1], [], []>} : vector<64x72xbf16>, vector<72x8xbf16>, vector<64x8xf32> -> vector<64x8xf32>
    %c0_3 = arith.constant 0 : index
    %c0_4 = arith.constant 0 : index
    %3 = vector.load %arg3[%c0_3, %c0_4] : memref<1x8xf32, #tpu.memory_space<vmem>>, vector<1x8xf32>
    %4 = vector.broadcast %3 : vector<1x8xf32> to vector<64x8xf32>
    %5 = arith.mulf %2, %4 : vector<64x8xf32>
    %c0_5 = arith.constant 0 : index
    %c0_6 = arith.constant 0 : index
    %6 = vector.load %arg4[%c0_5, %c0_6] : memref<1x8xf32, #tpu.memory_space<vmem>>, vector<1x8xf32>
    %7 = vector.broadcast %6 : vector<1x8xf32> to vector<64x8xf32>
    %8 = arith.addf %5, %7 : vector<64x8xf32>
    %c0_7 = arith.constant 0 : index
    %c0_8 = arith.constant 0 : index
    %9 = vector.load %arg5[%c0_7, %c0_8] : memref<64x4xbf16, #tpu.memory_space<vmem>>, vector<64x4xbf16>
    %c0_9 = arith.constant 0 : index
    %c0_10 = arith.constant 0 : index
    %10 = vector.load %arg6[%c0_9, %c0_10] : memref<4x8xbf16, #tpu.memory_space<vmem>>, vector<4x8xbf16>
    %cst_11 = arith.constant dense<0.000000e+00> : vector<64x8xf32>
    %11 = tpu.matmul %9, %10, %cst_11 {dimension_numbers = #tpu.dot_dimension_numbers<[1], [0], [0], [1], [0, 0, 1, 1], [], []>} : vector<64x4xbf16>, vector<4x8xbf16>, vector<64x8xf32> -> vector<64x8xf32>
    %12 = arith.addf %8, %11 : vector<64x8xf32>
    %cst_12 = arith.constant 0.000000e+00 : f32
    %13 = vector.broadcast %cst_12 : f32 to vector<64x8xf32>
    %14 = arith.maximumf %12, %13 : vector<64x8xf32>
    %c0_13 = arith.constant 0 : index
    %c0_14 = arith.constant 0 : index
    %15 = vector.load %arg7[%c0_13, %c0_14] : memref<64x8xf32, #tpu.memory_space<vmem>>, vector<64x8xf32>
    tpu.vector_store %arg7[%c0_13, %c0_14], %14 {strides = array<i32>} : memref<64x8xf32, #tpu.memory_space<vmem>>, vector<64x8xf32>,
    return
  }
  func.func @transform_0(%arg0: i32) -> (i32, i32) {
    %c0_i32 = arith.constant 0 : i32
    %c0_i32_0 = arith.constant 0 : i32
    return %arg0, %c0_i32 : i32, i32
  }
  func.func @transform_1(%arg0: i32) -> (i32, i32) {
    %c0_i32 = arith.constant 0 : i32
    %c0_i32_0 = arith.constant 0 : i32
    %c0_i32_1 = arith.constant 0 : i32
    return %c0_i32, %c0_i32_0 : i32, i32
  }
  func.func @transform_2(%arg0: i32) -> (i32, i32) {
    %c0_i32 = arith.constant 0 : i32
    %c0_i32_0 = arith.constant 0 : i32
    %c0_i32_1 = arith.constant 0 : i32
    return %c0_i32, %c0_i32_0 : i32, i32
  }
  func.func @transform_3(%arg0: i32) -> (i32, i32) {
    %c0_i32 = arith.constant 0 : i32
    %c0_i32_0 = arith.constant 0 : i32
    %c0_i32_1 = arith.constant 0 : i32
    return %c0_i32, %c0_i32_0 : i32, i32
  }
  func.func @transform_4(%arg0: i32) -> (i32, i32) {
    %c0_i32 = arith.constant 0 : i32
    %c0_i32_0 = arith.constant 0 : i32
    return %arg0, %c0_i32 : i32, i32
  }
  func.func @transform_5(%arg0: i32) -> (i32, i32) {
    %c0_i32 = arith.constant 0 : i32
    %c0_i32_0 = arith.constant 0 : i32
    %c0_i32_1 = arith.constant 0 : i32
    return %c0_i32, %c0_i32_0 : i32, i32
  }
  func.func @transform_6(%arg0: i32) -> (i32, i32) {
    %c0_i32 = arith.constant 0 : i32
    %c0_i32_0 = arith.constant 0 : i32
    return %arg0, %c0_i32 : i32, i32
  }
}

</mosaic_0001>

<bundles_post_ra>
// kernel: residual_block_forward.2
= control target key start
LH: loop header
LB: loop body
LE: loop exit
PB: predicated region body
PF: predicated region fallthrough
CT: control target
= control target key end

     0   :  { %s584_s15 = smov 0   ;;  %s631_s0 = inlined_call_operand.vmem [shape: bf16[128,36], index: 0, kind: input, shape index: {}]   ;;  %s632_s1 = inlined_call_operand.vmem [shape: bf16[36,8], index: 1, kind: input, shape index: {}]   ;;  %s633_s2 = inlined_call_operand.vmem [shape: f32[1,8], index: 2, kind: input, shape index: {}]   ;;  %s634_s3 = inlined_call_operand.vmem [shape: f32[1,8], index: 3, kind: input, shape index: {}]   ;;  %s635_s4 = inlined_call_operand.vmem [shape: bf16[128,8], index: 4, kind: output, shape index: {}]  }
   0x1 LB: > { %s467_s16 = sadd.s32 4294967295, %s557_s15   ;;  %p471_p0 = scmp.ge.s32.totalorder %s557_s15, 1  ;;  %s557_s15 = sphi %s584_s15, %s14_s15  }
   0x2   : > { %p163_p1 = scmp.lt.s32.totalorder %s557_s15, 3 }
   0x4   : > { %p164_p2 = pnand %p471_p0, %p163_p1 }
   0x5   : > { %v544_v0 = vld [vmem:[%s632_s1] sm:$0xff] (!%p164_p2)   ;;  %v545_v1 = vld [vmem:[%s632_s1 + $0x8] sm:$0xff] (!%p164_p2)   ;;  %s472_s21 = sshll.u32 (!%p164_p2), %s467_s16, 3  ;;  %v546_v2 = vld [vmem:[%s632_s1 + $0x10] ss:$0 sps:$4 sm:$0x33] (!%p164_p2)  }
   0x6   : > { %167 = sbr.rel (%p164_p2) target bundleno = 242 (0xf2), region = 36  ;;  %514 = vmatprep.subr.bf16.mxu0 (!%p164_p2), %v544_v0  ;;  %528 = vmatprep.subr.bf16.mxu1 (!%p164_p2), %v544_v0  ;;  %p190_p3 = scmp.lt.s32.totalorder (!%p164_p2), %s472_s21, 15  ;;  %vm263_vm0 = vcmask (!%p164_p2), 1041408   ;;  %vm250_vm1 = vcmask (!%p164_p2), 293888   ;;  %v487_v8 = vld [vmem:[%s633_s2] ss:$0 sm:$0xff] (!%p164_p2) }
   0x7   : > { %515 = vmatpush3.bf16.msra.mxu0 (!%p164_p2), %v544_v0  ;;  %531 = vmatpush3.bf16.msra.mxu1 (!%p164_p2), %v544_v0  ;;  %v265_v3 = vsel (!%p164_p2), %vm263_vm0, %v546_v2, 0  ;;  %v488_v10 = vld [vmem:[%s634_s3] ss:$0 sm:$0xff] (!%p164_p2)  ;;  %vm402_vm2 = vcmask (!%p164_p2), 60416  }
   0x8   : > { %516 = vmatprep.subr.bf16.mxu0 (!%p164_p2), %v545_v1  ;;  %529 = vmatprep.subr.bf16.mxu1 (!%p164_p2), %v545_v1 }
   0xb   : > { %517 = vmatpush3.bf16.msra.mxu0 (!%p164_p2), %v545_v1  ;;  %532 = vmatpush3.bf16.msra.mxu1 (!%p164_p2), %v545_v1 }
   0xc   : > { %534 = vmatprep.subr.msk.bf16.mxu0 (!%p164_p2), %vm263_vm0, %v546_v2  ;;  %535 = vmatprep.subr.msk.bf16.mxu1 (!%p164_p2), %vm263_vm0, %v546_v2 }
   0xd   : > { %s637_s21 = smov (!%p190_p3, %s472_s21), 15 }
   0xe   : > { %s473_s24 = sshll.u32 %s637_s21, 2 }
   0xf   : > { %s193_s27 = scalar_lea.vmem %s631_s0, %s473_s24  ;;  %519 = vmatpush3.bf16.msra.mxu0 %v265_v3  ;;  %533 = vmatpush3.bf16.msra.mxu1 %v265_v3  ;;  %s199_s8 = scalar_lea.vmem %s635_s4, %s473_s24 }
  0x10   : > { %v547_v4 = vld [vmem:[%s193_s27] sm:$0xff]   ;;  %v548_v5 = vld [vmem:[%s193_s27 + $0x10] sm:$0xff]   ;;  %v549_v6 = vld [vmem:[%s193_s27 + $0x8] sm:$0xff]  }
  0x11   : > { %520 = vmatprep.mubr.msk.bf16.mxu0 %vm250_vm1, %v547_v4  ;;  %v550_v7 = vld [vmem:[%s193_s27 + $0x18] sm:$0xff]   ;;  %524 = vmatprep.mubr.msk.bf16.mxu1 %vm250_vm1, %v548_v5 }
  0x12   : > { %521 = vmatmul.mubr.msk.bf16.vlgmr.msra.gmra.mrb[0].mxu0 %vm250_vm1, %v549_v6  ;;  %525 = vmatmul.mubr.msk.bf16.vlgmr.msra.gmra.mrb[0].mxu1 %vm250_vm1, %v550_v7 }
  0xe5   : > { %v522_v9 = vpop.f32.mrb[0].mxu0  ;;  %v526_v11 = vpop.f32.mrb[0].mxu1 }
  0xe6   : > { %v341_v12 = vmul.f32 %v522_v9, %v487_v8  ;;  %v345_v13 = vmul.f32 %v526_v11, %v487_v8  ;;  %v301_v14 = vpop.f32.mrb[1].mxu0  ;;  %v317_v15 = vpop.f32.mrb[1].mxu1 }
  0xe7   : > { %v339_v16 = vmul.f32 %v487_v8, %v301_v14  ;;  %v343_v17 = vmul.f32 %v487_v8, %v317_v15  ;;  %v523_v18 = vpop.f32.mrb[2].mxu0  ;;  %v527_v19 = vpop.f32.mrb[2].mxu1 }
  0xe8   : > { %v356_v20 = vadd.f32 %v488_v10, %v341_v12  ;;  %v360_v21 = vadd.f32 %v488_v10, %v345_v13  ;;  %v342_v22 = vmul.f32 %v523_v18, %v487_v8  ;;  %v346_v23 = vmul.f32 %v527_v19, %v487_v8  ;;  %v304_v24 = vpop.f32.mrb[3].mxu0  ;;  %v320_v25 = vpop.f32.mrb[3].mxu1 }
  0xe9   : > { %v354_v26 = vadd.f32 %v488_v10, %v339_v16  ;;  %v358_v27 = vadd.f32 %v488_v10, %v343_v17  ;;  %v340_v28 = vmul.f32 %v487_v8, %v304_v24  ;;  %v344_v29 = vmul.f32 %v487_v8, %v320_v25 }
  0xea   : > { %v364_v30 = vmax.f32 %v356_v20, 0.0  ;;  %v368_v31 = vmax.f32 %v360_v21, 0.0  ;;  %v357_v32 = vadd.f32 %v488_v10, %v342_v22  ;;  %v361_v33 = vadd.f32 %v488_v10, %v346_v23 }
  0xeb   : > { %v362_v34 = vmax.f32 %v354_v26, 0.0  ;;  %v366_v35 = vmax.f32 %v358_v27, 0.0  ;;  %v355_v36 = vadd.f32 %v488_v10, %v340_v28  ;;  %v359_v37 = vadd.f32 %v488_v10, %v344_v29 }
  0xec   : > { %v501_v38 = vpack.c.bf16 %v364_v30, %v364_v30  ;;  %v505_v39 = vpack.c.bf16 %v368_v31, %v368_v31  ;;  %v365_v40 = vmax.f32 %v357_v32, 0.0  ;;  %v369_v41 = vmax.f32 %v361_v33, 0.0 }
  0xed   : > { %v499_v42 = vpack.c.bf16 %v362_v34, %v362_v34  ;;  %v503_v43 = vpack.c.bf16 %v366_v35, %v366_v35  ;;  %v363_v44 = vmax.f32 %v355_v36, 0.0  ;;  %v367_v45 = vmax.f32 %v359_v37, 0.0 }
  0xee   : > { %405 = vst.msk [vmem:[%s199_s8 + $0x8] sm:$0xf] %vm402_vm2, %v501_v38  ;;  %409 = vst.msk [vmem:[%s199_s8 + $0x18] sm:$0xf] %vm402_vm2, %v505_v39  ;;  %v502_v46 = vpack.c.bf16 %v365_v40, %v365_v40  ;;  %v506_v47 = vpack.c.bf16 %v369_v41, %v369_v41 }
  0xef   : > { %403 = vst.msk [vmem:[%s199_s8] sm:$0xf] %vm402_vm2, %v499_v42  ;;  %407 = vst.msk [vmem:[%s199_s8 + $0x10] sm:$0xf] %vm402_vm2, %v503_v43  ;;  %v500_v48 = vpack.c.bf16 %v363_v44, %v363_v44  ;;  %v504_v49 = vpack.c.bf16 %v367_v45, %v367_v45 }
  0xf0   : > { %406 = vst.msk [vmem:[%s199_s8 + $0xc] sm:$0xf] %vm402_vm2, %v502_v46  ;;  %410 = vst.msk [vmem:[%s199_s8 + $0x1c] sm:$0xf] %vm402_vm2, %v506_v47 }
  0xf1   : > { %404 = vst.msk [vmem:[%s199_s8 + $0x4] sm:$0xf] %vm402_vm2, %v500_v48  ;;  %408 = vst.msk [vmem:[%s199_s8 + $0x14] sm:$0xf] %vm402_vm2, %v504_v49 }
  0xf2 PF: > { %s14_s15 = sadd.s32 1, %s557_s15  }
  0xf3   : > { %p11_p4 = scmp.ge.s32.totalorder %s14_s15, 4  }
  0xf5   :  { %13 = sbr.rel (!%p11_p4) target bundleno = 1 (0x1), region = 66 }

// kernel: residual_block_forward.3
= control target key start
LH: loop header
LB: loop body
LE: loop exit
PB: predicated region body
PF: predicated region fallthrough
CT: control target
= control target key end

     0   :  { %s802_s21 = smov 0   ;;  %s876_s0 = inlined_call_operand.vmem [shape: bf16[128,72], index: 0, kind: input, shape index: {}]   ;;  %s877_s1 = inlined_call_operand.vmem [shape: bf16[72,8], index: 1, kind: input, shape index: {}]   ;;  %s878_s2 = inlined_call_operand.vmem [shape: f32[1,8], index: 2, kind: input, shape index: {}]   ;;  %s879_s3 = inlined_call_operand.vmem [shape: f32[1,8], index: 3, kind: input, shape index: {}]   ;;  %s880_s4 = inlined_call_operand.vmem [shape: bf16[128,4], index: 4, kind: input, shape index: {}]   ;;  %s881_s5 = inlined_call_operand.vmem [shape: bf16[4,8], index: 5, kind: input, shape index: {}]   ;;  %s882_s6 = inlined_call_operand.vmem [shape: f32[128,8], index: 6, kind: output, shape index: {}]  }
   0x1 LB: > { %s658_s22 = sadd.s32 4294967295, %s765_s21   ;;  %p662_p0 = scmp.ge.s32.totalorder %s765_s21, 1  ;;  %s765_s21 = sphi %s802_s21, %s16_s21  }
   0x2   : > { %p224_p1 = scmp.lt.s32.totalorder %s765_s21, 3 }
   0x4   : > { %p225_p2 = pnand %p662_p0, %p224_p1 }
   0x5   : > { %v746_v0 = vld [vmem:[%s877_s1] sm:$0xff] (!%p225_p2)   ;;  %v747_v1 = vld [vmem:[%s877_s1 + $0x8] sm:$0xff] (!%p225_p2)   ;;  %vm496_vm0 = vcmask (!%p225_p2), 1041408   ;;  %s663_s27 = sshll.u32 (!%p225_p2), %s658_s22, 3  ;;  %v748_v2 = vld [vmem:[%s877_s1 + $0x10] sm:$0xff] (!%p225_p2)   ;;  %vm342_vm1 = vcmask (!%p225_p2), 588800  }
   0x6   : > { %228 = sbr.rel (%p225_p2) target bundleno = 258 (0x102), region = 44  ;;  %708 = vmatprep.subr.bf16.mxu0 (!%p225_p2), %v746_v0  ;;  %p260_p3 = scmp.lt.s32.totalorder (!%p225_p2), %s663_s27, 15  ;;  %v462_v3 = vld [vmem:[%s881_s5] sm:$0x3] (!%p225_p2)  ;;  %v749_v5 = vld [vmem:[%s877_s1 + $0x18] sm:$0xff] (!%p225_p2)   ;;  %vm483_vm2 = vcmask (!%p225_p2), 31744  }
   0x7   : > { %709 = vmatpush3.bf16.msra.mxu0 (!%p225_p2), %v746_v0  ;;  %737 = vmatprep.subr.msk.bf16.mxu1 (!%p225_p2), %vm496_vm0, %v462_v3  ;;  %v498_v4 = vsel (!%p225_p2), %vm496_vm0, %v462_v3, 0  ;;  %v750_v7 = vld [vmem:[%s877_s1 + $0x20] ss:$0 sps:$4 sm:$0xff] (!%p225_p2)   ;;  %vm355_vm3 = vcmask (!%p225_p2), 1043456   ;;  %vm581_vm4 = vcmask (!%p225_p2), 64512  }
   0x8   : > { %710 = vmatprep.subr.bf16.mxu0 (!%p225_p2), %v747_v1  ;;  %727 = vmatpush3.bf16.msra.mxu1 (!%p225_p2), %v498_v4  ;;  %v357_v11 = vsel (!%p225_p2), %vm355_vm3, %v750_v7, 0  ;;  %v682_v20 = vld [vmem:[%s878_s2] ss:$0 sm:$0xff] (!%p225_p2) }
   0x9   : > { %v683_v22 = vld [vmem:[%s879_s3] ss:$0 sm:$0xff] (!%p225_p2) }
   0xb   : > { %711 = vmatpush3.bf16.msra.mxu0 (!%p225_p2), %v747_v1 }
   0xc   : > { %712 = vmatprep.subr.bf16.mxu0 (!%p225_p2), %v748_v2 }
   0xd   : > { %s884_s27 = smov (!%p260_p3, %s663_s27), 15 }
   0xe   : > { %s664_s8 = sshll.u32 %s884_s27, 2  ;;  %s668_s24 = sshll.u32 %s884_s27, 3 }
   0xf   : > { %s263_s13 = scalar_lea.vmem %s876_s0, %s664_s8  ;;  %s269_s16 = scalar_lea.vmem %s880_s4, %s664_s8  ;;  %713 = vmatpush3.bf16.msra.mxu0 %v748_v2 }
  0x10   : > { %v751_v6 = vld [vmem:[%s263_s13] sm:$0xff]   ;;  %714 = vmatprep.subr.bf16.mxu0 %v749_v5  ;;  %v754_v9 = vld [vmem:[%s269_s16 + $0x8] sm:$0xff]   ;;  %v757_v10 = vld [vmem:[%s269_s16 + $0x10] sm:$0xff]   ;;  %s855_s28 = scalar_lea.vmem %s882_s6, %s668_s24 }
  0x11   : > { %718 = vmatprep.mubr.msk.bf16.mxu0 %vm342_vm1, %v751_v6  ;;  %v753_v8 = vld [vmem:[%s269_s16] sm:$0xff]   ;;  %v752_v12 = vld [vmem:[%s263_s13 + $0x8] sm:$0xff]   ;;  %v758_v13 = vld [vmem:[%s269_s16 + $0x18] sm:$0xff]  }
  0x12   : > { %728 = vmatprep.mubr.msk.bf16.mxu1 %vm483_vm2, %v753_v8  ;;  %v755_v14 = vld [vmem:[%s263_s13 + $0x10] sm:$0xff]   ;;  %v756_v15 = vld [vmem:[%s263_s13 + $0x18] sm:$0xff]  }
  0x13   : > { %729 = vmatmul.mubr.msk.bf16.vlgmr.msra.gmra.mrb[0].mxu1 %vm483_vm2, %v754_v9  ;;  %715 = vmatpush3.bf16.msra.mxu0 %v749_v5 }
  0x14   : > { %736 = vmatprep.subr.msk.bf16.mxu0 %vm355_vm3, %v750_v7  ;;  %732 = vmatprep.mubr.msk.bf16.mxu1 %vm483_vm2, %v757_v10 }
  0x17   : > { %717 = vmatpush3.bf16.msra.mxu0 %v357_v11 }
  0x1a   : > { %719 = vmatmul.mubr.msk.bf16.vlgmr.msra.gmra.mrb[0].mxu0 %vm342_vm1, %v752_v12 }
  0x1b   : > { %733 = vmatmul.mubr.msk.bf16.gmra.mrb[4].mxu1 %vm483_vm2, %v758_v13  ;;  %722 = vmatprep.mubr.msk.bf16.mxu0 %vm342_vm1, %v755_v14 }
  0x22   : > { %723 = vmatmul.mubr.msk.bf16.gmra.mrb[4].mxu0 %vm342_vm1, %v756_v15 }
  0xe6   : > { %v730_v16 = vpop.f32.mrb[0].mxu1 }
  0xe7   : > { %v534_v17 = vpop.f32.mrb[1].mxu1 }
  0xe8   : > { %v731_v18 = vpop.f32.mrb[2].mxu1 }
  0xe9   : > { %v537_v19 = vpop.f32.mrb[3].mxu1 }
  0xed   : > { %v720_v21 = vpop.f32.mrb[0].mxu0 }
  0xee   : > { %v734_v23 = vpop.f32.mrb[4].mxu1  ;;  %v433_v24 = vmul.f32 %v720_v21, %v682_v20  ;;  %v393_v25 = vpop.f32.mrb[1].mxu0 }
  0xef   : > { %v550_v26 = vpop.f32.mrb[5].mxu1  ;;  %v431_v27 = vmul.f32 %v682_v20, %v393_v25  ;;  %v721_v28 = vpop.f32.mrb[2].mxu0 }
  0xf0   : > { %v735_v29 = vpop.f32.mrb[6].mxu1  ;;  %v448_v30 = vadd.f32 %v683_v22, %v433_v24  ;;  %v434_v31 = vmul.f32 %v721_v28, %v682_v20  ;;  %v396_v32 = vpop.f32.mrb[3].mxu0 }
  0xf1   : > { %v553_v33 = vpop.f32.mrb[7].mxu1  ;;  %v446_v34 = vadd.f32 %v683_v22, %v431_v27  ;;  %v432_v35 = vmul.f32 %v682_v20, %v396_v32 }
  0xf2   : > { %v567_v36 = vadd.f32 %v730_v16, %v448_v30  ;;  %v449_v37 = vadd.f32 %v683_v22, %v434_v31 }
  0xf3   : > { %v565_v38 = vadd.f32 %v534_v17, %v446_v34  ;;  %v447_v39 = vadd.f32 %v683_v22, %v432_v35 }
  0xf4   : > { %v575_v40 = vmax.f32 %v567_v36, 0.0  ;;  %v568_v41 = vadd.f32 %v731_v18, %v449_v37 }
  0xf5   : > { %v573_v42 = vmax.f32 %v565_v38, 0.0  ;;  %v566_v43 = vadd.f32 %v537_v19, %v447_v39  ;;  %v724_v44 = vpop.f32.mrb[4].mxu0 }
  0xf6   : > { %584 = vst.msk [vmem:[%s855_s28 + $0x10] sm:$0xff] %vm581_vm4, %v575_v40  ;;  %v576_v45 = vmax.f32 %v568_v41, 0.0  ;;  %v437_v46 = vmul.f32 %v724_v44, %v682_v20  ;;  %v409_v47 = vpop.f32.mrb[5].mxu0 }
  0xf7   : > { %582 = vst.msk [vmem:[%s855_s28] sm:$0xff] %vm581_vm4, %v573_v42  ;;  %v574_v48 = vmax.f32 %v566_v43, 0.0  ;;  %v435_v49 = vmul.f32 %v682_v20, %v409_v47  ;;  %v725_v50 = vpop.f32.mrb[6].mxu0 }
  0xf8   : > { %585 = vst.msk [vmem:[%s855_s28 + $0x18] sm:$0xff] %vm581_vm4, %v576_v45  ;;  %v452_v51 = vadd.f32 %v683_v22, %v437_v46  ;;  %v438_v52 = vmul.f32 %v725_v50, %v682_v20  ;;  %v412_v53 = vpop.f32.mrb[7].mxu0 }
  0xf9   : > { %583 = vst.msk [vmem:[%s855_s28 + $0x8] sm:$0xff] %vm581_vm4, %v574_v48  ;;  %v450_v54 = vadd.f32 %v683_v22, %v435_v49  ;;  %v436_v55 = vmul.f32 %v682_v20, %v412_v53 }
  0xfa   : > { %v571_v56 = vadd.f32 %v734_v23, %v452_v51  ;;  %v453_v57 = vadd.f32 %v683_v22, %v438_v52 }
  0xfb   : > { %v569_v58 = vadd.f32 %v550_v26, %v450_v54  ;;  %v451_v59 = vadd.f32 %v683_v22, %v436_v55 }
  0xfc   : > { %v579_v60 = vmax.f32 %v571_v56, 0.0  ;;  %v572_v61 = vadd.f32 %v735_v29, %v453_v57 }
  0xfd   : > { %v577_v62 = vmax.f32 %v569_v58, 0.0  ;;  %v570_v63 = vadd.f32 %v553_v33, %v451_v59 }
  0xfe   : > { %588 = vst.msk [vmem:[%s855_s28 + $0x30] sm:$0xff] %vm581_vm4, %v579_v60  ;;  %v580_v0 = vmax.f32 %v572_v61, 0.0 }
  0xff   : > { %586 = vst.msk [vmem:[%s855_s28 + $0x20] sm:$0xff] %vm581_vm4, %v577_v62  ;;  %v578_v1 = vmax.f32 %v570_v63, 0.0 }
 0x100   : > { %589 = vst.msk [vmem:[%s855_s28 + $0x38] sm:$0xff] %vm581_vm4, %v580_v0 }
 0x101   : > { %587 = vst.msk [vmem:[%s855_s28 + $0x28] sm:$0xff] %vm581_vm4, %v578_v1 }
 0x102 PF: > { %s16_s21 = sadd.s32 1, %s765_s21  }
 0x103   : > { %p13_p4 = scmp.ge.s32.totalorder %s16_s21, 4  }
 0x105   :  { %15 = sbr.rel (!%p13_p4) target bundleno = 1 (0x1), region = 77 }

</bundles_post_ra>
